<compile_context>
chip_gen: v7x
topology: tpu7x:2x2x1
jax: 0.10.0
libtpu: 0.0.40
codegen_flags: <defaults>
</compile_context>

<pallas_src>
import functools
import math

import jax
import jax.numpy as jnp
from jax.experimental import pallas as pl
from jax.experimental.pallas import tpu as pltpu


NEG_INF = -1e30  # finite "-inf": keeps the online softmax free of inf-inf NaNs


def _round_up(n, m):
    return ((n + m - 1) // m) * m


# --------------------------------------------------------------------------
# Fused QKV projection: x (M, K) @ w (Htot, K, D) -> (Htot, M, D)  (head-major)
# --------------------------------------------------------------------------
def _proj_kernel_acc(x_ref, w_ref, o_ref, acc_ref):
    @pl.when(pl.program_id(2) == 0)
    def _():
        acc_ref[...] = jnp.zeros_like(acc_ref)

    acc_ref[...] += jnp.dot(x_ref[...], w_ref[0], preferred_element_type=jnp.float32)

    @pl.when(pl.program_id(2) == pl.num_programs(2) - 1)
    def _():
        o_ref[0] = acc_ref[...].astype(o_ref.dtype)


def _proj_kernel_single(x_ref, w_ref, o_ref):
    # Single K block: no fp32 accumulator round-trip (saves VMEM + vst traffic).
    o_ref[0] = jnp.dot(
        x_ref[...], w_ref[0], preferred_element_type=jnp.float32
    ).astype(o_ref.dtype)


def fused_qkv_projection(x2d, w_qkv, *, tm, tk):
    """x2d: (M, K) bf16, w_qkv: (Htot, K, D) bf16 -> (Htot, M, D) bf16."""
    M, K = x2d.shape
    Htot, K2, D = w_qkv.shape
    assert K == K2 and M % tm == 0 and K % tk == 0
    nm, nk = M // tm, K // tk

    if nk == 1:
        kernel, scratch = _proj_kernel_single, []
    else:
        kernel, scratch = _proj_kernel_acc, [pltpu.VMEM((tm, D), jnp.float32)]

    return pl.pallas_call(
        kernel,
        out_shape=jax.ShapeDtypeStruct((Htot, M, D), jnp.bfloat16),
        grid_spec=pltpu.PrefetchScalarGridSpec(
            num_scalar_prefetch=0,
            grid=(Htot, nm, nk),
            in_specs=[
                pl.BlockSpec((tm, tk), lambda h, i, k: (i, k)),
                pl.BlockSpec((1, tk, D), lambda h, i, k: (h, k, 0)),
            ],
            out_specs=pl.BlockSpec((1, tm, D), lambda h, i, k: (h, i, 0)),
            scratch_shapes=scratch,
        ),
        compiler_params=pltpu.CompilerParams(
            dimension_semantics=("parallel", "parallel", "arbitrary")),
    )(x2d, w_qkv)


# --------------------------------------------------------------------------
# Output projection: attn (Hq, M, D) @ wo (Hq, D, N) -> (M, N)
# Heads are the reduction grid axis -> no transpose between attention and wo.
# --------------------------------------------------------------------------
def _out_proj_kernel_acc(a_ref, w_ref, o_ref, acc_ref):
    @pl.when(pl.program_id(2) == 0)
    def _():
        acc_ref[...] = jnp.zeros_like(acc_ref)

    acc_ref[...] += jnp.dot(a_ref[0], w_ref[0], preferred_element_type=jnp.float32)

    @pl.when(pl.program_id(2) == pl.num_programs(2) - 1)
    def _():
        o_ref[...] = acc_ref[...].astype(o_ref.dtype)


def _out_proj_kernel_single(a_ref, w_ref, o_ref):
    o_ref[...] = jnp.dot(
        a_ref[0], w_ref[0], preferred_element_type=jnp.float32
    ).astype(o_ref.dtype)


def output_projection(attn, w_o, *, tm, tn, out_dtype):
    Hq, M, D = attn.shape
    Hq2, D2, N = w_o.shape
    assert Hq == Hq2 and D == D2 and M % tm == 0 and N % tn == 0
    nm, nn = M // tm, N // tn

    if Hq == 1:
        kernel, scratch = _out_proj_kernel_single, []
    else:
        kernel, scratch = _out_proj_kernel_acc, [pltpu.VMEM((tm, tn), jnp.float32)]

    return pl.pallas_call(
        kernel,
        out_shape=jax.ShapeDtypeStruct((M, N), out_dtype),
        grid_spec=pltpu.PrefetchScalarGridSpec(
            num_scalar_prefetch=0,
            grid=(nm, nn, Hq),
            in_specs=[
                pl.BlockSpec((1, tm, D), lambda i, j, h: (h, i, 0)),
                pl.BlockSpec((1, D, tn), lambda i, j, h: (h, 0, j)),
            ],
            out_specs=pl.BlockSpec((tm, tn), lambda i, j, h: (i, j)),
            scratch_shapes=scratch,
        ),
        compiler_params=pltpu.CompilerParams(
            dimension_semantics=("parallel", "parallel", "arbitrary")),
    )(attn, w_o)


# --------------------------------------------------------------------------
# Fused RoPE + causal online-softmax flash attention
# --------------------------------------------------------------------------
def _rope(x, cos, sin, *, half, use_roll):
    """fp32 rotary embedding: x*cos + rotate_half(x)*sin."""
    if use_roll:
        # rotate_half(x) == roll(x, D/2, lanes) * [-1]*half ++ [+1]*half
        # pltpu.roll uses the XLU slot and co-issues with VPU/MXU work.
        sign = jnp.where(
            jax.lax.broadcasted_iota(jnp.int32, x.shape, 1) < half, -1.0, 1.0
        ).astype(x.dtype)
        rot = pltpu.roll(x, shift=half, axis=1) * sign
    else:
        # head_dim not lane-aligned (tiny test shapes): plain slice/concat.
        rot = jnp.concatenate([-x[:, half:], x[:, :half]], axis=-1)
    return x * cos + rot * sin


def _flash_attn_kernel(q_ref, k_ref, v_ref, cos_q_ref, sin_q_ref, cos_k_ref,
                       sin_k_ref, o_ref, m_sc, l_sc, acc_sc, *,
                       scale, half, use_roll):
    qi = pl.program_id(2)
    ki = pl.program_id(3)

    @pl.when(ki == 0)
    def _init():
        m_sc[...] = jnp.full_like(m_sc, NEG_INF)
        l_sc[...] = jnp.zeros_like(l_sc)
        acc_sc[...] = jnp.zeros_like(acc_sc)

    # Causal: kv tiles strictly above the diagonal contribute nothing
    # (tq == tkv so tile-level causality is simply ki <= qi).
    @pl.when(ki <= qi)
    def _accumulate():
        q = q_ref[0].astype(jnp.float32)
        k = k_ref[0].astype(jnp.float32)

        # RoPE in fp32; fold 1/sqrt(D) into q (O(tq*D) instead of O(tq*tkv)).
        q = _rope(q, cos_q_ref[...], sin_q_ref[...], half=half, use_roll=use_roll) * scale
        k = _rope(k, cos_k_ref[...], sin_k_ref[...], half=half, use_roll=use_roll)

        # QK^T without materializing a transposed K tile (last-dim contraction).
        s = jax.lax.dot_general(
            q.astype(jnp.bfloat16), k.astype(jnp.bfloat16),
            dimension_numbers=(((1,), (1,)), ((), ())),
            preferred_element_type=jnp.float32)                    # (tq, tkv)

        tq, tkv = s.shape
        row = qi * tq + jax.lax.broadcasted_iota(jnp.int32, (tq, tkv), 0)
        col = ki * tkv + jax.lax.broadcasted_iota(jnp.int32, (tq, tkv), 1)
        s = jnp.where(col <= row, s, NEG_INF)

        m_prev = m_sc[...]
        m_new = jnp.maximum(m_prev, jnp.max(s, axis=-1, keepdims=True))
        alpha = jnp.exp(m_prev - m_new)
        p = jnp.exp(s - m_new)

        l_sc[...] = alpha * l_sc[...] + jnp.sum(p, axis=-1, keepdims=True)
        acc_sc[...] = alpha * acc_sc[...] + jnp.dot(
            p.astype(jnp.bfloat16), v_ref[0], preferred_element_type=jnp.float32)
        m_sc[...] = m_new

    @pl.when(ki == pl.num_programs(3) - 1)
    def _finalize():
        o_ref[0] = (acc_sc[...] * pl.reciprocal(l_sc[...], approx=True)
                    ).astype(o_ref.dtype)


def flash_attention(qkv, cos, sin, *, batch, seq_pad, tile,
                    n_heads, n_kv_heads, head_dim):
    """qkv: (Hq+2*Hkv, B*seq_pad, D) bf16 -> (Hq, B*seq_pad, D) bf16."""
    Htot, M, D = qkv.shape
    assert Htot == n_heads + 2 * n_kv_heads and M == batch * seq_pad and D == head_dim
    n_rep = n_heads // n_kv_heads
    nt = seq_pad // tile

    def q_map(b, h, qi, ki):
        return (h, b * nt + qi, 0)

    def k_map(b, h, qi, ki):              # repeat_kv (GQA) for free via index_map
        return (n_heads + h // n_rep, b * nt + ki, 0)

    def v_map(b, h, qi, ki):
        return (n_heads + n_kv_heads + h // n_rep, b * nt + ki, 0)

    def rope_q_map(b, h, qi, ki):
        return (qi, 0)

    def rope_k_map(b, h, qi, ki):
        return (ki, 0)

    kernel = functools.partial(
        _flash_attn_kernel,
        scale=1.0 / math.sqrt(head_dim),
        half=head_dim // 2,
        use_roll=(head_dim % 128 == 0),   # lane-aligned head_dim -> XLU roll path
    )

    return pl.pallas_call(
        kernel,
        out_shape=jax.ShapeDtypeStruct((n_heads, M, D), jnp.bfloat16),
        grid_spec=pltpu.PrefetchScalarGridSpec(
            num_scalar_prefetch=0,
            grid=(batch, n_heads, nt, nt),
            in_specs=[
                pl.BlockSpec((1, tile, D), q_map),
                pl.BlockSpec((1, tile, D), k_map),
                pl.BlockSpec((1, tile, D), v_map),
                pl.BlockSpec((tile, D), rope_q_map),
                pl.BlockSpec((tile, D), rope_q_map),
                pl.BlockSpec((tile, D), rope_k_map),
                pl.BlockSpec((tile, D), rope_k_map),
            ],
            out_specs=pl.BlockSpec((1, tile, D), q_map),
            scratch_shapes=[
                pltpu.VMEM((tile, 1), jnp.float32),   # running max m
                pltpu.VMEM((tile, 1), jnp.float32),   # running denom l
                pltpu.VMEM((tile, D), jnp.float32),   # fp32 output accumulator
            ],
        ),
        compiler_params=pltpu.CompilerParams(
            dimension_semantics=("parallel", "parallel", "parallel", "arbitrary")),
    )(qkv, qkv, qkv, cos, sin, cos, sin)


# --------------------------------------------------------------------------
# Plain-JAX glue: parameters, RoPE table, full forward
# --------------------------------------------------------------------------
def precompute_rope_angle(dim, seq_len, theta=10000.0):
    inv_freq = 1.0 / (theta ** (jnp.arange(0, dim, 2, dtype=jnp.float32) / dim))
    t = jnp.arange(seq_len, dtype=jnp.float32)
    freqs = jnp.outer(t, inv_freq)
    emb = jnp.concatenate([freqs, freqs], axis=-1)
    return jnp.cos(emb), jnp.sin(emb)


class LlamaAttentionPallas:
    # Tile caps: blocks + double-buffering stay well under the 32 MiB scoped
    # VMEM default on v5e/v6e and v7x (64 MiB physical).
    MAX_SEQ_TILE = 256        # tq = tkv (multiple of 8; 256 at real seq lengths)
    MAX_K_TILE = 512          # contraction tile for the QKV projection
    MAX_N_TILE = 512          # output-column tile for the wo projection

    def __init__(self, dim, n_heads, n_kv_heads, max_seq_len,
                 rope_theta=10000.0, key=jax.random.PRNGKey(0)):
        self.dim = dim
        self.n_heads = n_heads
        self.n_kv_heads = n_kv_heads
        self.n_rep = n_heads // n_kv_heads
        self.head_dim = dim // n_heads
        D, Hq, Hkv = self.head_dim, n_heads, n_kv_heads

        kq, kk, kv, ko = jax.random.split(key, 4)
        scale = 1.0 / math.sqrt(dim)
        # Logical layout: (in_features, out_features), y = x @ W (no bias).
        wq = jax.random.normal(kq, (dim, Hq * D), jnp.float32) * scale
        wk = jax.random.normal(kk, (dim, Hkv * D), jnp.float32) * scale
        wv = jax.random.normal(kv, (dim, Hkv * D), jnp.float32) * scale
        wo = jax.random.normal(ko, (dim, dim), jnp.float32) * scale

        # One-time head-major re-layout + bf16 cast (halves projection HBM traffic).
        def to_head_major(w, n_h):
            return jnp.transpose(w.reshape(dim, n_h, D), (1, 0, 2))
        self.w_qkv = jnp.concatenate(
            [to_head_major(wq, Hq), to_head_major(wk, Hkv), to_head_major(wv, Hkv)],
            axis=0).astype(jnp.bfloat16)                         # (Hq+2*Hkv, dim, D)
        self.w_o = wo.reshape(Hq, D, dim).astype(jnp.bfloat16)   # (Hq, D, dim)

        # Pad contraction / output dims to their tiles once, at init.
        self.k_tile = dim if dim <= self.MAX_K_TILE else self.MAX_K_TILE
        self.k_pad = _round_up(dim, self.k_tile)
        if self.k_pad != dim:
            self.w_qkv = jnp.pad(self.w_qkv, ((0, 0), (0, self.k_pad - dim), (0, 0)))

        self.n_tile = dim if dim <= self.MAX_N_TILE else self.MAX_N_TILE
        self.n_pad = _round_up(dim, self.n_tile)
        if self.n_pad != dim:
            self.w_o = jnp.pad(self.w_o, ((0, 0), (0, 0), (0, self.n_pad - dim)))

        self.cos, self.sin = precompute_rope_angle(D, max_seq_len, rope_theta)

    def __call__(self, hidden_states):
        B, S, _ = hidden_states.shape
        D, Hq, Hkv = self.head_dim, self.n_heads, self.n_kv_heads

        # Sequence tile (q and kv); pad S so it divides evenly (padded kv columns
        # are automatically excluded by the causal mask, padded rows are sliced).
        ts = min(_round_up(S, 8), self.MAX_SEQ_TILE)
        s_pad = _round_up(S, ts)
        x = hidden_states
        if s_pad != S:
            x = jnp.pad(x, ((0, 0), (0, s_pad - S), (0, 0)))
        M = B * s_pad

        x2d = x.reshape(M, self.dim).astype(jnp.bfloat16)
        if self.k_pad != self.dim:
            x2d = jnp.pad(x2d, ((0, 0), (0, self.k_pad - self.dim)))

        # 1) fused QKV projection, head-major output (no transposes downstream)
        qkv = fused_qkv_projection(x2d, self.w_qkv, tm=ts, tk=self.k_tile)

        # 2) RoPE + repeat_kv + causal online-softmax flash attention
        cos = self.cos[:S]
        sin = self.sin[:S]
        if s_pad != S:
            cos = jnp.pad(cos, ((0, s_pad - S), (0, 0)))
            sin = jnp.pad(sin, ((0, s_pad - S), (0, 0)))
        attn = flash_attention(qkv, cos, sin, batch=B, seq_pad=s_pad, tile=ts,
                               n_heads=Hq, n_kv_heads=Hkv, head_dim=D)

        # 3) output projection, reducing over heads (consumes head-major layout)
        out2d = output_projection(attn, self.w_o, tm=ts, tn=self.n_tile,
                                  out_dtype=hidden_states.dtype)
        out = out2d[:, :self.dim].reshape(B, s_pad, self.dim)
        return out[:, :S, :]


if __name__ == "__main__":
    # Small shapes consistent with the module: dim=32, n_heads=4, n_kv_heads=2
    # (GQA, n_rep=2), head_dim=8, batch=2, seq=8.
    B, S = 2, 8
    DIM, N_HEADS, N_KV_HEADS, MAX_SEQ = 32, 4, 2, 16

    key = jax.random.PRNGKey(0)
    k_in, k_params = jax.random.split(key)
    hidden_states = jax.random.normal(k_in, (B, S, DIM), jnp.float32)

    module = LlamaAttentionPallas(DIM, N_HEADS, N_KV_HEADS, MAX_SEQ, key=k_params)
    out = jax.block_until_ready(module(hidden_states))

    assert out.shape == (B, S, DIM) and out.dtype == jnp.float32
    assert bool(jnp.all(jnp.isfinite(out)))
    print("KERNEL_OK")
</pallas_src>

<mosaic_0001>
module attributes {stable_mosaic.version = 11 : i64} {
  func.func @_proj_kernel_single(%arg0: i32, %arg1: i32, %arg2: i32, %arg3: memref<8x32xbf16, #tpu.memory_space<vmem>>, %arg4: memref<1x32x8xbf16, #tpu.memory_space<vmem>>, %arg5: memref<1x8x8xbf16, #tpu.memory_space<vmem>>) attributes {dimension_semantics = [#tpu.dimension_semantics<parallel>, #tpu.dimension_semantics<parallel>, #tpu.dimension_semantics<arbitrary>], iteration_bounds = array<i64: 8, 2, 1>, scalar_prefetch = 0 : i64, scratch_operands = 0 : i64, tpu.core_type = #tpu.core_type<tc>, window_params = [{transform_indices = @transform_0, window_bounds = array<i64: 8, 32>}, {transform_indices = @transform_1, window_bounds = array<i64: 1, 32, 8>}, {transform_indices = @transform_2, window_bounds = array<i64: 1, 8, 8>}]} {
    %c0 = arith.constant 0 : index
    %c0_0 = arith.constant 0 : index
    %0 = vector.load %arg3[%c0, %c0_0] : memref<8x32xbf16, #tpu.memory_space<vmem>>, vector<8x32xbf16>
    %c0_1 = arith.constant 0 : index
    %c0_2 = arith.constant 0 : index
    %c0_3 = arith.constant 0 : index
    %1 = vector.load %arg4[%c0_1, %c0_2, %c0_3] : memref<1x32x8xbf16, #tpu.memory_space<vmem>>, vector<1x32x8xbf16>
    %2 = vector.shape_cast %1 : vector<1x32x8xbf16> to vector<32x8xbf16>
    %cst = arith.constant dense<0.000000e+00> : vector<8x8xf32>
    %3 = tpu.matmul %0, %2, %cst {dimension_numbers = #tpu.dot_dimension_numbers<[1], [0], [0], [1], [0, 0, 1, 1], [], []>} : vector<8x32xbf16>, vector<32x8xbf16>, vector<8x8xf32> -> vector<8x8xf32>
    %4 = arith.truncf %3 : vector<8x8xf32> to vector<8x8xbf16>
    %c0_4 = arith.constant 0 : index
    %c0_5 = arith.constant 0 : index
    %c0_6 = arith.constant 0 : index
    %5 = vector.load %arg5[%c0_4, %c0_5, %c0_6] : memref<1x8x8xbf16, #tpu.memory_space<vmem>>, vector<1x8x8xbf16>
    %6 = vector.shape_cast %5 : vector<1x8x8xbf16> to vector<8x8xbf16>
    %7 = vector.shape_cast %4 : vector<8x8xbf16> to vector<1x8x8xbf16>
    tpu.vector_store %arg5[%c0_4, %c0_5, %c0_6], %7 {strides = array<i32>} : memref<1x8x8xbf16, #tpu.memory_space<vmem>>, vector<1x8x8xbf16>,
    return
  }
  func.func @transform_0(%arg0: i32, %arg1: i32, %arg2: i32) -> (i32, i32) {
    %c0_i32 = arith.constant 0 : i32
    return %arg1, %arg2 : i32, i32
  }
  func.func @transform_1(%arg0: i32, %arg1: i32, %arg2: i32) -> (i32, i32, i32) {
    %c0_i32 = arith.constant 0 : i32
    %c0_i32_0 = arith.constant 0 : i32
    return %arg0, %arg2, %c0_i32 : i32, i32, i32
  }
  func.func @transform_2(%arg0: i32, %arg1: i32, %arg2: i32) -> (i32, i32, i32) {
    %c0_i32 = arith.constant 0 : i32
    %c0_i32_0 = arith.constant 0 : i32
    return %arg0, %arg1, %c0_i32 : i32, i32, i32
  }
}

</mosaic_0001>

<bundles_post_ra>
// kernel: tpu_custom_call.1
= control target key start
LH: loop header
LB: loop body
LE: loop exit
PB: predicated region body
PF: predicated region fallthrough
CT: control target
= control target key end

     0   :  { %s512_s9 = smov 0   ;;  %s514_s10 = smov 0   ;;  %s566_s0 = inlined_call_operand.vmem [shape: bf16[16,32], index: 0, kind: input, shape index: {}]   ;;  %s567_s1 = inlined_call_operand.vmem [shape: bf16[8,32,8], index: 1, kind: input, shape index: {}]   ;;  %s568_s2 = inlined_call_operand.vmem [shape: bf16[8,16,8], index: 2, kind: output, shape index: {}]  }
   0x1   :  { %s516_s11 = smov 0   ;;  %s518_s12 = smov 0  }
   0x2   :  { %s520_s13 = smov 0  }
   0x3 LB: > { %s27_s14 = sadd.s32 1, %s485_s11  ;;  %s31_s15 = sadd.s32 1, %s489_s12  ;;  %s493_s13 = sphi %s520_s13, %s12_s13   ;;  %s489_s12 = sphi %s518_s12, %s572_s12   ;;  %s485_s11 = sphi %s516_s11, %s571_s11   ;;  %s481_s10 = sphi %s514_s10, %s570_s10   ;;  %s477_s9 = sphi %s512_s9, %s569_s9  }
   0x4   : > { %p29_p0 = scmp.ge.s32.totalorder %s27_s14, 2  ;;  %p388_p1 = scmp.ge.s32.totalorder %s493_s13, 1 }
   0x5   : > { %p154_p2 = scmp.lt.s32.totalorder %s493_s13, 17 }
   0x6   : > { %s574_s14 = smov (%p29_p0, %s27_s14), 0  ;;  %s576_s15 = smov (!%p29_p0, %s31_s15), %s489_s12 }
   0x7   : > { %p155_p3 = pnand %p388_p1, %p154_p2  ;;  %p33_p4 = scmp.ge.s32.totalorder %s576_s15, 8 }
   0x8   : > { %p198_p5 = scmp.lt.s32.totalorder (!%p155_p3), %s481_s10, 7  ;;  %p190_p6 = scmp.lt.s32.totalorder (!%p155_p3), %s477_s9, 1  ;;  %v495_v0 = vmov (!%p155_p3), 0.0   ;;  %vm496_vm0 = vmmov (!%p155_p3), 0   ;;  %vm233_vm1 = vcmask (!%p155_p3), 261120   ;;  %vm278_vm2 = vcmask (!%p155_p3), 60416  }
   0x9   : > { %s578_s15 = smov (%p33_p4, %s576_s15), 0  ;;  %158 = sbr.rel (%p155_p3) target bundleno = 242 (0xf2), region = 28 }
   0xa   : > { %403 = vmatprep.subr.bf16.mxu0 (!%p155_p3), %v495_v0  ;;  %407 = vmatprep.mubr.msk.bf16.mxu0 (!%p155_p3), %vm496_vm0, %v495_v0 }
  0x10   : > { %s580_s10 = smov (!%p198_p5, %s481_s10), 7  ;;  %s582_s9 = smov (!%p190_p6, %s477_s9), 1 }
  0x11   : > { %s399_s16 = sshll.u32 %s580_s10, 4  ;;  %s392_s17 = sshll.u32 %s580_s10, 1 }
  0x12   : > { %s205_s20 = scalar_lea.vmem %s567_s1, %s399_s16  ;;  %s389_s21 = sshll.u32 %s582_s9, 2 }
  0x13   : > { %v453_v1 = vld [vmem:[%s205_s20] sm:$0xff]   ;;  %s212_s22 = sadd.s32 %s392_s17, %s582_s9  ;;  %v454_v2 = vld [vmem:[%s205_s20 + $0x8] sm:$0xff]   ;;  %s196_s25 = scalar_lea.vmem %s566_s0, %s389_s21 }
  0x14   : > { %404 = vmatpush3.bf16.msra.mxu0 %v453_v1  ;;  %v216_v3 = vld [vmem:[%s196_s25] sm:$0xf]  ;;  %s393_s26 = sshll.u32 %s212_s22, 2 }
  0x15   : > { %405 = vmatprep.subr.bf16.mxu0 %v495_v0  ;;  %s214_s29 = scalar_lea.vmem %s568_s2, %s393_s26 }
  0x18   : > { %406 = vmatpush3.bf16.msra.mxu0 %v454_v2 }
  0x1b   : > { %408 = vmatmul.mubr.msk.bf16.vlgmr.msra.gmra.mrb[0].mxu0 %vm233_vm1, %v216_v3 }
  0xee   : > { %v271_v4 = vpop.f32.mrb[0].mxu0 }
  0xef   : > { %v277_v5 = vpack.c.bf16 %v271_v4, %v271_v4  ;;  %v409_v6 = vpop.f32.mrb[1].mxu0 }
  0xf0   : > { %v274_v7 = vpop.f32.mrb[2].mxu0 }
  0xf1   : > { %279 = vst.msk [vmem:[%s214_s29] sm:$0xf] %vm278_vm2, %v277_v5  ;;  %v410_v8 = vpop.f32.mrb[3].mxu0 }
  0xf2 PF: > { %s12_s13 = sadd.s32 1, %s493_s13   ;;  %s569_s9 = smov %s485_s11 }
  0xf3   : > { %p9_p7 = scmp.ge.s32.totalorder %s12_s13, 18   ;;  %s570_s10 = smov %s489_s12 }
  0xf4   : > { %s571_s11 = smov %s574_s14  ;;  %s572_s12 = smov %s578_s15 }
  0xf5   :  { %11 = sbr.rel (!%p9_p7) target bundleno = 3 (0x3), region = 61 }

</bundles_post_ra>
